<compile_context>
chip_gen: v7x
topology: tpu7x:2x2x1
jax: 0.10.0
libtpu: 0.0.40
codegen_flags: <defaults>
</compile_context>

<pallas_src>
import jax
import jax.numpy as jnp
from jax.experimental import pallas as pl
from jax.experimental.pallas import tpu as pltpu

EPS = 1e-5


def gdc_kernel(x_ref, wdw_ref, wlin_ref, o_ref, y_ref):
    # x_ref:    (HW, Bt, C)  bf16/f32  current batch tile, spatial-major
    # wdw_ref:  (HW, C)      f32       depthwise 7x7 filter, flattened
    # wlin_ref: (C, E)       f32       linear weight (transposed vs torch (E, C))
    # o_ref:    (B, E)       f32       final embedding (constant block index)
    # y_ref:    (B, C)       f32       resident conv output (VMEM scratch)
    i = pl.program_id(0)
    hw, bt, c = x_ref.shape

    # --- depthwise 7x7 conv: 49 VPU multiply-adds on (Bt, C) slabs, f32 acc ---
    def body(h, acc):
        xh = x_ref[h].astype(jnp.float32)                   # (Bt, C)
        wh = wdw_ref[pl.ds(h, 1), :].astype(jnp.float32)    # (1, C)
        return acc + xh * wh

    y_tile = jax.lax.fori_loop(
        0, hw, body, jnp.zeros((bt, c), jnp.float32), unroll=True)

    # Keep this tile's conv output resident on-chip for the batch-stat finalize.
    start = pl.multiple_of(i * bt, bt)
    y_ref[pl.ds(start, bt), :] = y_tile

    # --- last tile: BN2d (batch stats) -> Linear (MXU) -> BN1d (batch stats) ---
    @pl.when(i == pl.num_programs(0) - 1)
    def _():
        y = y_ref[...]                                       # (B, C)
        mu = jnp.mean(y, axis=0, keepdims=True)
        var = jnp.mean((y - mu) * (y - mu), axis=0, keepdims=True)
        yn = (y - mu) * jax.lax.rsqrt(var + EPS)

        z = jnp.dot(yn, wlin_ref[...],
                    preferred_element_type=jnp.float32)      # (B, E)

        mu2 = jnp.mean(z, axis=0, keepdims=True)
        var2 = jnp.mean((z - mu2) * (z - mu2), axis=0, keepdims=True)
        o_ref[...] = (z - mu2) * jax.lax.rsqrt(var2 + EPS)


def _pick_batch_tile(B, HW, C, itemsize, x_budget_bytes=24 * 2**20):
    """Largest batch tile whose double-buffered x block fits the VMEM budget,
    divides B, and is a multiple of 8 (unless it equals B)."""
    per_row = 2 * HW * C * itemsize            # double-buffered bytes per batch row
    if B <= 8 or B * per_row <= x_budget_bytes:
        return B                               # whole batch fits: single tile
    bt = int(min(B, max(8, x_budget_bytes // per_row)))
    bt = (bt // 8) * 8
    while bt > 8 and B % bt != 0:
        bt -= 8
    return bt if (bt >= 8 and B % bt == 0) else B


def gdc_forward_hwbc(x_hwbc, wdw_hwc, wlin_ce, *, block_b=None):
    """Pre-layouted entry point.
    x_hwbc: (49, B, C) activations (bf16 or f32); wdw_hwc: (49, C) f32;
    wlin_ce: (C, E) f32. Returns (B, E) f32."""
    HW, B, C = x_hwbc.shape
    E = wlin_ce.shape[1]
    assert HW == 49, "GDC expects a 7x7 spatial input (valid 7x7 conv)"
    itemsize = jnp.dtype(x_hwbc.dtype).itemsize

    bt = block_b if block_b is not None else _pick_batch_tile(B, HW, C, itemsize)
    assert B % bt == 0, "batch tile must divide the batch"
    grid = (B // bt,)

    vmem_need = (2 * HW * bt * C * itemsize    # double-buffered x tiles
                 + 2 * HW * C * 4              # depthwise weights
                 + 2 * C * E * 4               # linear weights
                 + 2 * B * E * 4               # output block
                 + B * C * 4)                  # resident y scratch
    vmem_limit = int(min(max(int(vmem_need * 1.5), 32 * 2**20), 64 * 2**20))

    cost = pl.CostEstimate(
        flops=2 * B * C * (HW + E) + 8 * B * (C + E),
        transcendentals=C + E,
        bytes_accessed=(B * HW * C * itemsize + HW * C * 4 + C * E * 4
                        + B * E * 4),
    )

    return pl.pallas_call(
        gdc_kernel,
        out_shape=jax.ShapeDtypeStruct((B, E), jnp.float32),
        grid_spec=pltpu.PrefetchScalarGridSpec(
            num_scalar_prefetch=0,
            grid=grid,
            in_specs=[
                pl.BlockSpec((HW, bt, C), lambda i: (0, i, 0)),   # x batch tile
                pl.BlockSpec((HW, C), lambda i: (0, 0)),          # depthwise W
                pl.BlockSpec((C, E), lambda i: (0, 0)),           # linear W
            ],
            out_specs=pl.BlockSpec((B, E), lambda i: (0, 0)),
            scratch_shapes=[pltpu.VMEM((B, C), jnp.float32)],
        ),
        compiler_params=pltpu.CompilerParams(
            dimension_semantics=("arbitrary",),
            vmem_limit_bytes=vmem_limit,
        ),
        cost_estimate=cost,
    )(x_hwbc, wdw_hwc, wlin_ce)


def gdc_forward(x_nchw, w_dw, w_lin, *, x_dtype=jnp.bfloat16, block_b=None):
    """Torch-layout entry point. x_nchw: (B, C, 7, 7); w_dw: (C, 1, 7, 7)
    depthwise Conv2d weight; w_lin: (E, C) Linear weight. Returns (B, E) f32."""
    B, C, H, W = x_nchw.shape
    assert (H, W) == (7, 7), "GDC expects a 7x7 spatial input (valid 7x7 conv)"
    HW = H * W
    # TODO(synk): at production sizes have the upstream producer emit the
    # (HW, B, C) channels-last layout directly (or fuse this transpose) so x
    # isn't round-tripped through HBM an extra time before the kernel.
    x = jnp.transpose(x_nchw, (2, 3, 0, 1)).reshape(HW, B, C).astype(x_dtype)
    wdw = jnp.transpose(w_dw.reshape(C, HW), (1, 0)).astype(jnp.float32)   # (HW, C)
    wlin = jnp.transpose(w_lin, (1, 0)).astype(jnp.float32)                # (C, E)
    return gdc_forward_hwbc(x, wdw, wlin, block_b=block_b)


def gdc_reference(x_nchw, w_dw, w_lin):
    """Plain-JAX reference replicating the PyTorch training-mode forward."""
    B, C, H, W = x_nchw.shape
    y = jnp.sum(x_nchw * w_dw.reshape(1, C, H, W), axis=(2, 3))   # (B, C)
    mu = jnp.mean(y, axis=0, keepdims=True)
    var = jnp.mean((y - mu) ** 2, axis=0, keepdims=True)
    y = (y - mu) / jnp.sqrt(var + EPS)
    z = y @ w_lin.T
    mu2 = jnp.mean(z, axis=0, keepdims=True)
    var2 = jnp.mean((z - mu2) ** 2, axis=0, keepdims=True)
    return (z - mu2) / jnp.sqrt(var2 + EPS)


def _run_case(key, B, C, E, block_b=None):
    kx, kd, kl = jax.random.split(key, 3)
    x = jax.random.normal(kx, (B, C, 7, 7), dtype=jnp.float32)
    w_dw = 0.1 * jax.random.normal(kd, (C, 1, 7, 7), dtype=jnp.float32)
    w_lin = 0.1 * jax.random.normal(kl, (E, C), dtype=jnp.float32)

    out = gdc_forward(x, w_dw, w_lin, block_b=block_b)
    out = jax.block_until_ready(out)

    # Kernel transfers x as bf16 (f32 math inside); compare against the
    # reference evaluated on the same bf16-rounded activations.
    x_bf = x.astype(jnp.bfloat16).astype(jnp.float32)
    ref = gdc_reference(x_bf, w_dw, w_lin)

    assert out.shape == (B, E)
    assert jnp.allclose(out, ref, atol=2e-3, rtol=2e-3)


if __name__ == "__main__":
    key = jax.random.PRNGKey(0)
    k0, k1 = jax.random.split(key)

    # Small shapes matching the module's forward (single batch tile).
    _run_case(k0, B=2, C=8, E=16)

    # Small multi-tile, lane-dense case exercising the batch-tiled pipeline,
    # resident-y scratch and pl.when finalize (grid of 2 tiles of 8 rows).
    _run_case(k1, B=16, C=128, E=128, block_b=8)

    print("KERNEL_OK")
</pallas_src>

<mosaic_0001>
module attributes {stable_mosaic.version = 11 : i64} {
  func.func @gdc_kernel(%arg0: i32, %arg1: memref<49x2x8xbf16, #tpu.memory_space<vmem>>, %arg2: memref<49x8xf32, #tpu.memory_space<vmem>>, %arg3: memref<8x16xf32, #tpu.memory_space<vmem>>, %arg4: memref<2x16xf32, #tpu.memory_space<vmem>>, %arg5: memref<2x8xf32, #tpu.memory_space<vmem>>) attributes {dimension_semantics = [#tpu.dimension_semantics<arbitrary>], iteration_bounds = array<i64: 1>, scalar_prefetch = 0 : i64, scratch_operands = 1 : i64, tpu.core_type = #tpu.core_type<tc>, window_params = [{transform_indices = @transform_0, window_bounds = array<i64: 49, 2, 8>}, {pipeline_mode = #tpu.pipeline_mode<synchronous>, transform_indices = @transform_1, window_bounds = array<i64: 49, 8>}, {pipeline_mode = #tpu.pipeline_mode<synchronous>, transform_indices = @transform_2, window_bounds = array<i64: 8, 16>}, {pipeline_mode = #tpu.pipeline_mode<synchronous>, transform_indices = @transform_3, window_bounds = array<i64: 2, 16>}]} {
    %cst = arith.constant 0.000000e+00 : f32
    %0 = vector.broadcast %cst : f32 to vector<2x8xf32>
    %c0_i32 = arith.constant 0 : i32
    %1 = arith.index_cast %c0_i32 : i32 to index
    %c0 = arith.constant 0 : index
    %c0_0 = arith.constant 0 : index
    %2 = vector.load %arg1[%1, %c0, %c0_0] : memref<49x2x8xbf16, #tpu.memory_space<vmem>>, vector<1x2x8xbf16>
    %3 = vector.shape_cast %2 : vector<1x2x8xbf16> to vector<2x8xbf16>
    %4 = arith.extf %3 : vector<2x8xbf16> to vector<2x8xf32>
    %5 = arith.index_cast %c0_i32 : i32 to index
    %c0_1 = arith.constant 0 : index
    %6 = vector.load %arg2[%5, %c0_1] : memref<49x8xf32, #tpu.memory_space<vmem>>, vector<1x8xf32>
    %7 = vector.broadcast %6 : vector<1x8xf32> to vector<2x8xf32>
    %8 = arith.mulf %4, %7 : vector<2x8xf32>
    %9 = arith.addf %0, %8 : vector<2x8xf32>
    %c1_i32 = arith.constant 1 : i32
    %10 = arith.index_cast %c1_i32 : i32 to index
    %c0_2 = arith.constant 0 : index
    %c0_3 = arith.constant 0 : index
    %11 = vector.load %arg1[%10, %c0_2, %c0_3] : memref<49x2x8xbf16, #tpu.memory_space<vmem>>, vector<1x2x8xbf16>
    %12 = vector.shape_cast %11 : vector<1x2x8xbf16> to vector<2x8xbf16>
    %13 = arith.extf %12 : vector<2x8xbf16> to vector<2x8xf32>
    %14 = arith.index_cast %c1_i32 : i32 to index
    %c0_4 = arith.constant 0 : index
    %15 = vector.load %arg2[%14, %c0_4] : memref<49x8xf32, #tpu.memory_space<vmem>>, vector<1x8xf32>
    %16 = vector.broadcast %15 : vector<1x8xf32> to vector<2x8xf32>
    %17 = arith.mulf %13, %16 : vector<2x8xf32>
    %18 = arith.addf %9, %17 : vector<2x8xf32>
    %c2_i32 = arith.constant 2 : i32
    %19 = arith.index_cast %c2_i32 : i32 to index
    %c0_5 = arith.constant 0 : index
    %c0_6 = arith.constant 0 : index
    %20 = vector.load %arg1[%19, %c0_5, %c0_6] : memref<49x2x8xbf16, #tpu.memory_space<vmem>>, vector<1x2x8xbf16>
    %21 = vector.shape_cast %20 : vector<1x2x8xbf16> to vector<2x8xbf16>
    %22 = arith.extf %21 : vector<2x8xbf16> to vector<2x8xf32>
    %23 = arith.index_cast %c2_i32 : i32 to index
    %c0_7 = arith.constant 0 : index
    %24 = vector.load %arg2[%23, %c0_7] : memref<49x8xf32, #tpu.memory_space<vmem>>, vector<1x8xf32>
    %25 = vector.broadcast %24 : vector<1x8xf32> to vector<2x8xf32>
    %26 = arith.mulf %22, %25 : vector<2x8xf32>
    %27 = arith.addf %18, %26 : vector<2x8xf32>
    %c3_i32 = arith.constant 3 : i32
    %28 = arith.index_cast %c3_i32 : i32 to index
    %c0_8 = arith.constant 0 : index
    %c0_9 = arith.constant 0 : index
    %29 = vector.load %arg1[%28, %c0_8, %c0_9] : memref<49x2x8xbf16, #tpu.memory_space<vmem>>, vector<1x2x8xbf16>
    %30 = vector.shape_cast %29 : vector<1x2x8xbf16> to vector<2x8xbf16>
    %31 = arith.extf %30 : vector<2x8xbf16> to vector<2x8xf32>
    %32 = arith.index_cast %c3_i32 : i32 to index
    %c0_10 = arith.constant 0 : index
    %33 = vector.load %arg2[%32, %c0_10] : memref<49x8xf32, #tpu.memory_space<vmem>>, vector<1x8xf32>
    %34 = vector.broadcast %33 : vector<1x8xf32> to vector<2x8xf32>
    %35 = arith.mulf %31, %34 : vector<2x8xf32>
    %36 = arith.addf %27, %35 : vector<2x8xf32>
    %c4_i32 = arith.constant 4 : i32
    %37 = arith.index_cast %c4_i32 : i32 to index
    %c0_11 = arith.constant 0 : index
    %c0_12 = arith.constant 0 : index
    %38 = vector.load %arg1[%37, %c0_11, %c0_12] : memref<49x2x8xbf16, #tpu.memory_space<vmem>>, vector<1x2x8xbf16>
    %39 = vector.shape_cast %38 : vector<1x2x8xbf16> to vector<2x8xbf16>
    %40 = arith.extf %39 : vector<2x8xbf16> to vector<2x8xf32>
    %41 = arith.index_cast %c4_i32 : i32 to index
    %c0_13 = arith.constant 0 : index
    %42 = vector.load %arg2[%41, %c0_13] : memref<49x8xf32, #tpu.memory_space<vmem>>, vector<1x8xf32>
    %43 = vector.broadcast %42 : vector<1x8xf32> to vector<2x8xf32>
    %44 = arith.mulf %40, %43 : vector<2x8xf32>
    %45 = arith.addf %36, %44 : vector<2x8xf32>
    %c5_i32 = arith.constant 5 : i32
    %46 = arith.index_cast %c5_i32 : i32 to index
    %c0_14 = arith.constant 0 : index
    %c0_15 = arith.constant 0 : index
    %47 = vector.load %arg1[%46, %c0_14, %c0_15] : memref<49x2x8xbf16, #tpu.memory_space<vmem>>, vector<1x2x8xbf16>
    %48 = vector.shape_cast %47 : vector<1x2x8xbf16> to vector<2x8xbf16>
    %49 = arith.extf %48 : vector<2x8xbf16> to vector<2x8xf32>
    %50 = arith.index_cast %c5_i32 : i32 to index
    %c0_16 = arith.constant 0 : index
    %51 = vector.load %arg2[%50, %c0_16] : memref<49x8xf32, #tpu.memory_space<vmem>>, vector<1x8xf32>
    %52 = vector.broadcast %51 : vector<1x8xf32> to vector<2x8xf32>
    %53 = arith.mulf %49, %52 : vector<2x8xf32>
    %54 = arith.addf %45, %53 : vector<2x8xf32>
    %c6_i32 = arith.constant 6 : i32
    %55 = arith.index_cast %c6_i32 : i32 to index
    %c0_17 = arith.constant 0 : index
    %c0_18 = arith.constant 0 : index
    %56 = vector.load %arg1[%55, %c0_17, %c0_18] : memref<49x2x8xbf16, #tpu.memory_space<vmem>>, vector<1x2x8xbf16>
    %57 = vector.shape_cast %56 : vector<1x2x8xbf16> to vector<2x8xbf16>
    %58 = arith.extf %57 : vector<2x8xbf16> to vector<2x8xf32>
    %59 = arith.index_cast %c6_i32 : i32 to index
    %c0_19 = arith.constant 0 : index
    %60 = vector.load %arg2[%59, %c0_19] : memref<49x8xf32, #tpu.memory_space<vmem>>, vector<1x8xf32>
    %61 = vector.broadcast %60 : vector<1x8xf32> to vector<2x8xf32>
    %62 = arith.mulf %58, %61 : vector<2x8xf32>
    %63 = arith.addf %54, %62 : vector<2x8xf32>
    %c7_i32 = arith.constant 7 : i32
    %64 = arith.index_cast %c7_i32 : i32 to index
    %c0_20 = arith.constant 0 : index
    %c0_21 = arith.constant 0 : index
    %65 = vector.load %arg1[%64, %c0_20, %c0_21] : memref<49x2x8xbf16, #tpu.memory_space<vmem>>, vector<1x2x8xbf16>
    %66 = vector.shape_cast %65 : vector<1x2x8xbf16> to vector<2x8xbf16>
    %67 = arith.extf %66 : vector<2x8xbf16> to vector<2x8xf32>
    %68 = arith.index_cast %c7_i32 : i32 to index
    %c0_22 = arith.constant 0 : index
    %69 = vector.load %arg2[%68, %c0_22] : memref<49x8xf32, #tpu.memory_space<vmem>>, vector<1x8xf32>
    %70 = vector.broadcast %69 : vector<1x8xf32> to vector<2x8xf32>
    %71 = arith.mulf %67, %70 : vector<2x8xf32>
    %72 = arith.addf %63, %71 : vector<2x8xf32>
    %c8_i32 = arith.constant 8 : i32
    %73 = arith.index_cast %c8_i32 : i32 to index
    %c0_23 = arith.constant 0 : index
    %c0_24 = arith.constant 0 : index
    %74 = vector.load %arg1[%73, %c0_23, %c0_24] : memref<49x2x8xbf16, #tpu.memory_space<vmem>>, vector<1x2x8xbf16>
    %75 = vector.shape_cast %74 : vector<1x2x8xbf16> to vector<2x8xbf16>
    %76 = arith.extf %75 : vector<2x8xbf16> to vector<2x8xf32>
    %77 = arith.index_cast %c8_i32 : i32 to index
    %c0_25 = arith.constant 0 : index
    %78 = vector.load %arg2[%77, %c0_25] : memref<49x8xf32, #tpu.memory_space<vmem>>, vector<1x8xf32>
    %79 = vector.broadcast %78 : vector<1x8xf32> to vector<2x8xf32>
    %80 = arith.mulf %76, %79 : vector<2x8xf32>
    %81 = arith.addf %72, %80 : vector<2x8xf32>
    %c9_i32 = arith.constant 9 : i32
    %82 = arith.index_cast %c9_i32 : i32 to index
    %c0_26 = arith.constant 0 : index
    %c0_27 = arith.constant 0 : index
    %83 = vector.load %arg1[%82, %c0_26, %c0_27] : memref<49x2x8xbf16, #tpu.memory_space<vmem>>, vector<1x2x8xbf16>
    %84 = vector.shape_cast %83 : vector<1x2x8xbf16> to vector<2x8xbf16>
    %85 = arith.extf %84 : vector<2x8xbf16> to vector<2x8xf32>
    %86 = arith.index_cast %c9_i32 : i32 to index
    %c0_28 = arith.constant 0 : index
    %87 = vector.load %arg2[%86, %c0_28] : memref<49x8xf32, #tpu.memory_space<vmem>>, vector<1x8xf32>
    %88 = vector.broadcast %87 : vector<1x8xf32> to vector<2x8xf32>
    %89 = arith.mulf %85, %88 : vector<2x8xf32>
    %90 = arith.addf %81, %89 : vector<2x8xf32>
    %c10_i32 = arith.constant 10 : i32
    %91 = arith.index_cast %c10_i32 : i32 to index
    %c0_29 = arith.constant 0 : index
    %c0_30 = arith.constant 0 : index
    %92 = vector.load %arg1[%91, %c0_29, %c0_30] : memref<49x2x8xbf16, #tpu.memory_space<vmem>>, vector<1x2x8xbf16>
    %93 = vector.shape_cast %92 : vector<1x2x8xbf16> to vector<2x8xbf16>
    %94 = arith.extf %93 : vector<2x8xbf16> to vector<2x8xf32>
    %95 = arith.index_cast %c10_i32 : i32 to index
    %c0_31 = arith.constant 0 : index
    %96 = vector.load %arg2[%95, %c0_31] : memref<49x8xf32, #tpu.memory_space<vmem>>, vector<1x8xf32>
    %97 = vector.broadcast %96 : vector<1x8xf32> to vector<2x8xf32>
    %98 = arith.mulf %94, %97 : vector<2x8xf32>
    %99 = arith.addf %90, %98 : vector<2x8xf32>
    %c11_i32 = arith.constant 11 : i32
    %100 = arith.index_cast %c11_i32 : i32 to index
    %c0_32 = arith.constant 0 : index
    %c0_33 = arith.constant 0 : index
    %101 = vector.load %arg1[%100, %c0_32, %c0_33] : memref<49x2x8xbf16, #tpu.memory_space<vmem>>, vector<1x2x8xbf16>
    %102 = vector.shape_cast %101 : vector<1x2x8xbf16> to vector<2x8xbf16>
    %103 = arith.extf %102 : vector<2x8xbf16> to vector<2x8xf32>
    %104 = arith.index_cast %c11_i32 : i32 to index
    %c0_34 = arith.constant 0 : index
    %105 = vector.load %arg2[%104, %c0_34] : memref<49x8xf32, #tpu.memory_space<vmem>>, vector<1x8xf32>
    %106 = vector.broadcast %105 : vector<1x8xf32> to vector<2x8xf32>
    %107 = arith.mulf %103, %106 : vector<2x8xf32>
    %108 = arith.addf %99, %107 : vector<2x8xf32>
    %c12_i32 = arith.constant 12 : i32
    %109 = arith.index_cast %c12_i32 : i32 to index
    %c0_35 = arith.constant 0 : index
    %c0_36 = arith.constant 0 : index
    %110 = vector.load %arg1[%109, %c0_35, %c0_36] : memref<49x2x8xbf16, #tpu.memory_space<vmem>>, vector<1x2x8xbf16>
    %111 = vector.shape_cast %110 : vector<1x2x8xbf16> to vector<2x8xbf16>
    %112 = arith.extf %111 : vector<2x8xbf16> to vector<2x8xf32>
    %113 = arith.index_cast %c12_i32 : i32 to index
    %c0_37 = arith.constant 0 : index
    %114 = vector.load %arg2[%113, %c0_37] : memref<49x8xf32, #tpu.memory_space<vmem>>, vector<1x8xf32>
    %115 = vector.broadcast %114 : vector<1x8xf32> to vector<2x8xf32>
    %116 = arith.mulf %112, %115 : vector<2x8xf32>
    %117 = arith.addf %108, %116 : vector<2x8xf32>
    %c13_i32 = arith.constant 13 : i32
    %118 = arith.index_cast %c13_i32 : i32 to index
    %c0_38 = arith.constant 0 : index
    %c0_39 = arith.constant 0 : index
    %119 = vector.load %arg1[%118, %c0_38, %c0_39] : memref<49x2x8xbf16, #tpu.memory_space<vmem>>, vector<1x2x8xbf16>
    %120 = vector.shape_cast %119 : vector<1x2x8xbf16> to vector<2x8xbf16>
    %121 = arith.extf %120 : vector<2x8xbf16> to vector<2x8xf32>
    %122 = arith.index_cast %c13_i32 : i32 to index
    %c0_40 = arith.constant 0 : index
    %123 = vector.load %arg2[%122, %c0_40] : memref<49x8xf32, #tpu.memory_space<vmem>>, vector<1x8xf32>
    %124 = vector.broadcast %123 : vector<1x8xf32> to vector<2x8xf32>
    %125 = arith.mulf %121, %124 : vector<2x8xf32>
    %126 = arith.addf %117, %125 : vector<2x8xf32>
    %c14_i32 = arith.constant 14 : i32
    %127 = arith.index_cast %c14_i32 : i32 to index
    %c0_41 = arith.constant 0 : index
    %c0_42 = arith.constant 0 : index
    %128 = vector.load %arg1[%127, %c0_41, %c0_42] : memref<49x2x8xbf16, #tpu.memory_space<vmem>>, vector<1x2x8xbf16>
    %129 = vector.shape_cast %128 : vector<1x2x8xbf16> to vector<2x8xbf16>
    %130 = arith.extf %129 : vector<2x8xbf16> to vector<2x8xf32>
    %131 = arith.index_cast %c14_i32 : i32 to index
    %c0_43 = arith.constant 0 : index
    %132 = vector.load %arg2[%131, %c0_43] : memref<49x8xf32, #tpu.memory_space<vmem>>, vector<1x8xf32>
    %133 = vector.broadcast %132 : vector<1x8xf32> to vector<2x8xf32>
    %134 = arith.mulf %130, %133 : vector<2x8xf32>
    %135 = arith.addf %126, %134 : vector<2x8xf32>
    %c15_i32 = arith.constant 15 : i32
    %136 = arith.index_cast %c15_i32 : i32 to index
    %c0_44 = arith.constant 0 : index
    %c0_45 = arith.constant 0 : index
    %137 = vector.load %arg1[%136, %c0_44, %c0_45] : memref<49x2x8xbf16, #tpu.memory_space<vmem>>, vector<1x2x8xbf16>
    %138 = vector.shape_cast %137 : vector<1x2x8xbf16> to vector<2x8xbf16>
    %139 = arith.extf %138 : vector<2x8xbf16> to vector<2x8xf32>
    %140 = arith.index_cast %c15_i32 : i32 to index
    %c0_46 = arith.constant 0 : index
    %141 = vector.load %arg2[%140, %c0_46] : memref<49x8xf32, #tpu.memory_space<vmem>>, vector<1x8xf32>
    %142 = vector.broadcast %141 : vector<1x8xf32> to vector<2x8xf32>
    %143 = arith.mulf %139, %142 : vector<2x8xf32>
    %144 = arith.addf %135, %143 : vector<2x8xf32>
    %c16_i32 = arith.constant 16 : i32
    %145 = arith.index_cast %c16_i32 : i32 to index
    %c0_47 = arith.constant 0 : index
    %c0_48 = arith.constant 0 : index
    %146 = vector.load %arg1[%145, %c0_47, %c0_48] : memref<49x2x8xbf16, #tpu.memory_space<vmem>>, vector<1x2x8xbf16>
    %147 = vector.shape_cast %146 : vector<1x2x8xbf16> to vector<2x8xbf16>
    %148 = arith.extf %147 : vector<2x8xbf16> to vector<2x8xf32>
    %149 = arith.index_cast %c16_i32 : i32 to index
    %c0_49 = arith.constant 0 : index
    %150 = vector.load %arg2[%149, %c0_49] : memref<49x8xf32, #tpu.memory_space<vmem>>, vector<1x8xf32>
    %151 = vector.broadcast %150 : vector<1x8xf32> to vector<2x8xf32>
    %152 = arith.mulf %148, %151 : vector<2x8xf32>
    %153 = arith.addf %144, %152 : vector<2x8xf32>
    %c17_i32 = arith.constant 17 : i32
    %154 = arith.index_cast %c17_i32 : i32 to index
    %c0_50 = arith.constant 0 : index
    %c0_51 = arith.constant 0 : index
    %155 = vector.load %arg1[%154, %c0_50, %c0_51] : memref<49x2x8xbf16, #tpu.memory_space<vmem>>, vector<1x2x8xbf16>
    %156 = vector.shape_cast %155 : vector<1x2x8xbf16> to vector<2x8xbf16>
    %157 = arith.extf %156 : vector<2x8xbf16> to vector<2x8xf32>
    %158 = arith.index_cast %c17_i32 : i32 to index
    %c0_52 = arith.constant 0 : index
    %159 = vector.load %arg2[%158, %c0_52] : memref<49x8xf32, #tpu.memory_space<vmem>>, vector<1x8xf32>
    %160 = vector.broadcast %159 : vector<1x8xf32> to vector<2x8xf32>
    %161 = arith.mulf %157, %160 : vector<2x8xf32>
    %162 = arith.addf %153, %161 : vector<2x8xf32>
    %c18_i32 = arith.constant 18 : i32
    %163 = arith.index_cast %c18_i32 : i32 to index
    %c0_53 = arith.constant 0 : index
    %c0_54 = arith.constant 0 : index
    %164 = vector.load %arg1[%163, %c0_53, %c0_54] : memref<49x2x8xbf16, #tpu.memory_space<vmem>>, vector<1x2x8xbf16>
    %165 = vector.shape_cast %164 : vector<1x2x8xbf16> to vector<2x8xbf16>
    %166 = arith.extf %165 : vector<2x8xbf16> to vector<2x8xf32>
    %167 = arith.index_cast %c18_i32 : i32 to index
    %c0_55 = arith.constant 0 : index
    %168 = vector.load %arg2[%167, %c0_55] : memref<49x8xf32, #tpu.memory_space<vmem>>, vector<1x8xf32>
    %169 = vector.broadcast %168 : vector<1x8xf32> to vector<2x8xf32>
    %170 = arith.mulf %166, %169 : vector<2x8xf32>
    %171 = arith.addf %162, %170 : vector<2x8xf32>
    %c19_i32 = arith.constant 19 : i32
    %172 = arith.index_cast %c19_i32 : i32 to index
    %c0_56 = arith.constant 0 : index
    %c0_57 = arith.constant 0 : index
    %173 = vector.load %arg1[%172, %c0_56, %c0_57] : memref<49x2x8xbf16, #tpu.memory_space<vmem>>, vector<1x2x8xbf16>
    %174 = vector.shape_cast %173 : vector<1x2x8xbf16> to vector<2x8xbf16>
    %175 = arith.extf %174 : vector<2x8xbf16> to vector<2x8xf32>
    %176 = arith.index_cast %c19_i32 : i32 to index
    %c0_58 = arith.constant 0 : index
    %177 = vector.load %arg2[%176, %c0_58] : memref<49x8xf32, #tpu.memory_space<vmem>>, vector<1x8xf32>
    %178 = vector.broadcast %177 : vector<1x8xf32> to vector<2x8xf32>
    %179 = arith.mulf %175, %178 : vector<2x8xf32>
    %180 = arith.addf %171, %179 : vector<2x8xf32>
    %c20_i32 = arith.constant 20 : i32
    %181 = arith.index_cast %c20_i32 : i32 to index
    %c0_59 = arith.constant 0 : index
    %c0_60 = arith.constant 0 : index
    %182 = vector.load %arg1[%181, %c0_59, %c0_60] : memref<49x2x8xbf16, #tpu.memory_space<vmem>>, vector<1x2x8xbf16>
    %183 = vector.shape_cast %182 : vector<1x2x8xbf16> to vector<2x8xbf16>
    %184 = arith.extf %183 : vector<2x8xbf16> to vector<2x8xf32>
    %185 = arith.index_cast %c20_i32 : i32 to index
    %c0_61 = arith.constant 0 : index
    %186 = vector.load %arg2[%185, %c0_61] : memref<49x8xf32, #tpu.memory_space<vmem>>, vector<1x8xf32>
    %187 = vector.broadcast %186 : vector<1x8xf32> to vector<2x8xf32>
    %188 = arith.mulf %184, %187 : vector<2x8xf32>
    %189 = arith.addf %180, %188 : vector<2x8xf32>
    %c21_i32 = arith.constant 21 : i32
    %190 = arith.index_cast %c21_i32 : i32 to index
    %c0_62 = arith.constant 0 : index
    %c0_63 = arith.constant 0 : index
    %191 = vector.load %arg1[%190, %c0_62, %c0_63] : memref<49x2x8xbf16, #tpu.memory_space<vmem>>, vector<1x2x8xbf16>
    %192 = vector.shape_cast %191 : vector<1x2x8xbf16> to vector<2x8xbf16>
    %193 = arith.extf %192 : vector<2x8xbf16> to vector<2x8xf32>
    %194 = arith.index_cast %c21_i32 : i32 to index
    %c0_64 = arith.constant 0 : index
    %195 = vector.load %arg2[%194, %c0_64] : memref<49x8xf32, #tpu.memory_space<vmem>>, vector<1x8xf32>
    %196 = vector.broadcast %195 : vector<1x8xf32> to vector<2x8xf32>
    %197 = arith.mulf %193, %196 : vector<2x8xf32>
    %198 = arith.addf %189, %197 : vector<2x8xf32>
    %c22_i32 = arith.constant 22 : i32
    %199 = arith.index_cast %c22_i32 : i32 to index
    %c0_65 = arith.constant 0 : index
    %c0_66 = arith.constant 0 : index
    %200 = vector.load %arg1[%199, %c0_65, %c0_66] : memref<49x2x8xbf16, #tpu.memory_space<vmem>>, vector<1x2x8xbf16>
    %201 = vector.shape_cast %200 : vector<1x2x8xbf16> to vector<2x8xbf16>
    %202 = arith.extf %201 : vector<2x8xbf16> to vector<2x8xf32>
    %203 = arith.index_cast %c22_i32 : i32 to index
    %c0_67 = arith.constant 0 : index
    %204 = vector.load %arg2[%203, %c0_67] : memref<49x8xf32, #tpu.memory_space<vmem>>, vector<1x8xf32>
    %205 = vector.broadcast %204 : vector<1x8xf32> to vector<2x8xf32>
    %206 = arith.mulf %202, %205 : vector<2x8xf32>
    %207 = arith.addf %198, %206 : vector<2x8xf32>
    %c23_i32 = arith.constant 23 : i32
    %208 = arith.index_cast %c23_i32 : i32 to index
    %c0_68 = arith.constant 0 : index
    %c0_69 = arith.constant 0 : index
    %209 = vector.load %arg1[%208, %c0_68, %c0_69] : memref<49x2x8xbf16, #tpu.memory_space<vmem>>, vector<1x2x8xbf16>
    %210 = vector.shape_cast %209 : vector<1x2x8xbf16> to vector<2x8xbf16>
    %211 = arith.extf %210 : vector<2x8xbf16> to vector<2x8xf32>
    %212 = arith.index_cast %c23_i32 : i32 to index
    %c0_70 = arith.constant 0 : index
    %213 = vector.load %arg2[%212, %c0_70] : memref<49x8xf32, #tpu.memory_space<vmem>>, vector<1x8xf32>
    %214 = vector.broadcast %213 : vector<1x8xf32> to vector<2x8xf32>
    %215 = arith.mulf %211, %214 : vector<2x8xf32>
    %216 = arith.addf %207, %215 : vector<2x8xf32>
    %c24_i32 = arith.constant 24 : i32
    %217 = arith.index_cast %c24_i32 : i32 to index
    %c0_71 = arith.constant 0 : index
    %c0_72 = arith.constant 0 : index
    %218 = vector.load %arg1[%217, %c0_71, %c0_72] : memref<49x2x8xbf16, #tpu.memory_space<vmem>>, vector<1x2x8xbf16>
    %219 = vector.shape_cast %218 : vector<1x2x8xbf16> to vector<2x8xbf16>
    %220 = arith.extf %219 : vector<2x8xbf16> to vector<2x8xf32>
    %221 = arith.index_cast %c24_i32 : i32 to index
    %c0_73 = arith.constant 0 : index
    %222 = vector.load %arg2[%221, %c0_73] : memref<49x8xf32, #tpu.memory_space<vmem>>, vector<1x8xf32>
    %223 = vector.broadcast %222 : vector<1x8xf32> to vector<2x8xf32>
    %224 = arith.mulf %220, %223 : vector<2x8xf32>
    %225 = arith.addf %216, %224 : vector<2x8xf32>
    %c25_i32 = arith.constant 25 : i32
    %226 = arith.index_cast %c25_i32 : i32 to index
    %c0_74 = arith.constant 0 : index
    %c0_75 = arith.constant 0 : index
    %227 = vector.load %arg1[%226, %c0_74, %c0_75] : memref<49x2x8xbf16, #tpu.memory_space<vmem>>, vector<1x2x8xbf16>
    %228 = vector.shape_cast %227 : vector<1x2x8xbf16> to vector<2x8xbf16>
    %229 = arith.extf %228 : vector<2x8xbf16> to vector<2x8xf32>
    %230 = arith.index_cast %c25_i32 : i32 to index
    %c0_76 = arith.constant 0 : index
    %231 = vector.load %arg2[%230, %c0_76] : memref<49x8xf32, #tpu.memory_space<vmem>>, vector<1x8xf32>
    %232 = vector.broadcast %231 : vector<1x8xf32> to vector<2x8xf32>
    %233 = arith.mulf %229, %232 : vector<2x8xf32>
    %234 = arith.addf %225, %233 : vector<2x8xf32>
    %c26_i32 = arith.constant 26 : i32
    %235 = arith.index_cast %c26_i32 : i32 to index
    %c0_77 = arith.constant 0 : index
    %c0_78 = arith.constant 0 : index
    %236 = vector.load %arg1[%235, %c0_77, %c0_78] : memref<49x2x8xbf16, #tpu.memory_space<vmem>>, vector<1x2x8xbf16>
    %237 = vector.shape_cast %236 : vector<1x2x8xbf16> to vector<2x8xbf16>
    %238 = arith.extf %237 : vector<2x8xbf16> to vector<2x8xf32>
    %239 = arith.index_cast %c26_i32 : i32 to index
    %c0_79 = arith.constant 0 : index
    %240 = vector.load %arg2[%239, %c0_79] : memref<49x8xf32, #tpu.memory_space<vmem>>, vector<1x8xf32>
    %241 = vector.broadcast %240 : vector<1x8xf32> to vector<2x8xf32>
    %242 = arith.mulf %238, %241 : vector<2x8xf32>
    %243 = arith.addf %234, %242 : vector<2x8xf32>
    %c27_i32 = arith.constant 27 : i32
    %244 = arith.index_cast %c27_i32 : i32 to index
    %c0_80 = arith.constant 0 : index
    %c0_81 = arith.constant 0 : index
    %245 = vector.load %arg1[%244, %c0_80, %c0_81] : memref<49x2x8xbf16, #tpu.memory_space<vmem>>, vector<1x2x8xbf16>
    %246 = vector.shape_cast %245 : vector<1x2x8xbf16> to vector<2x8xbf16>
    %247 = arith.extf %246 : vector<2x8xbf16> to vector<2x8xf32>
    %248 = arith.index_cast %c27_i32 : i32 to index
    %c0_82 = arith.constant 0 : index
    %249 = vector.load %arg2[%248, %c0_82] : memref<49x8xf32, #tpu.memory_space<vmem>>, vector<1x8xf32>
    %250 = vector.broadcast %249 : vector<1x8xf32> to vector<2x8xf32>
    %251 = arith.mulf %247, %250 : vector<2x8xf32>
    %252 = arith.addf %243, %251 : vector<2x8xf32>
    %c28_i32 = arith.constant 28 : i32
    %253 = arith.index_cast %c28_i32 : i32 to index
    %c0_83 = arith.constant 0 : index
    %c0_84 = arith.constant 0 : index
    %254 = vector.load %arg1[%253, %c0_83, %c0_84] : memref<49x2x8xbf16, #tpu.memory_space<vmem>>, vector<1x2x8xbf16>
    %255 = vector.shape_cast %254 : vector<1x2x8xbf16> to vector<2x8xbf16>
    %256 = arith.extf %255 : vector<2x8xbf16> to vector<2x8xf32>
    %257 = arith.index_cast %c28_i32 : i32 to index
    %c0_85 = arith.constant 0 : index
    %258 = vector.load %arg2[%257, %c0_85] : memref<49x8xf32, #tpu.memory_space<vmem>>, vector<1x8xf32>
    %259 = vector.broadcast %258 : vector<1x8xf32> to vector<2x8xf32>
    %260 = arith.mulf %256, %259 : vector<2x8xf32>
    %261 = arith.addf %252, %260 : vector<2x8xf32>
    %c29_i32 = arith.constant 29 : i32
    %262 = arith.index_cast %c29_i32 : i32 to index
    %c0_86 = arith.constant 0 : index
    %c0_87 = arith.constant 0 : index
    %263 = vector.load %arg1[%262, %c0_86, %c0_87] : memref<49x2x8xbf16, #tpu.memory_space<vmem>>, vector<1x2x8xbf16>
    %264 = vector.shape_cast %263 : vector<1x2x8xbf16> to vector<2x8xbf16>
    %265 = arith.extf %264 : vector<2x8xbf16> to vector<2x8xf32>
    %266 = arith.index_cast %c29_i32 : i32 to index
    %c0_88 = arith.constant 0 : index
    %267 = vector.load %arg2[%266, %c0_88] : memref<49x8xf32, #tpu.memory_space<vmem>>, vector<1x8xf32>
    %268 = vector.broadcast %267 : vector<1x8xf32> to vector<2x8xf32>
    %269 = arith.mulf %265, %268 : vector<2x8xf32>
    %270 = arith.addf %261, %269 : vector<2x8xf32>
    %c30_i32 = arith.constant 30 : i32
    %271 = arith.index_cast %c30_i32 : i32 to index
    %c0_89 = arith.constant 0 : index
    %c0_90 = arith.constant 0 : index
    %272 = vector.load %arg1[%271, %c0_89, %c0_90] : memref<49x2x8xbf16, #tpu.memory_space<vmem>>, vector<1x2x8xbf16>
    %273 = vector.shape_cast %272 : vector<1x2x8xbf16> to vector<2x8xbf16>
    %274 = arith.extf %273 : vector<2x8xbf16> to vector<2x8xf32>
    %275 = arith.index_cast %c30_i32 : i32 to index
    %c0_91 = arith.constant 0 : index
    %276 = vector.load %arg2[%275, %c0_91] : memref<49x8xf32, #tpu.memory_space<vmem>>, vector<1x8xf32>
    %277 = vector.broadcast %276 : vector<1x8xf32> to vector<2x8xf32>
    %278 = arith.mulf %274, %277 : vector<2x8xf32>
    %279 = arith.addf %270, %278 : vector<2x8xf32>
    %c31_i32 = arith.constant 31 : i32
    %280 = arith.index_cast %c31_i32 : i32 to index
    %c0_92 = arith.constant 0 : index
    %c0_93 = arith.constant 0 : index
    %281 = vector.load %arg1[%280, %c0_92, %c0_93] : memref<49x2x8xbf16, #tpu.memory_space<vmem>>, vector<1x2x8xbf16>
    %282 = vector.shape_cast %281 : vector<1x2x8xbf16> to vector<2x8xbf16>
    %283 = arith.extf %282 : vector<2x8xbf16> to vector<2x8xf32>
    %284 = arith.index_cast %c31_i32 : i32 to index
    %c0_94 = arith.constant 0 : index
    %285 = vector.load %arg2[%284, %c0_94] : memref<49x8xf32, #tpu.memory_space<vmem>>, vector<1x8xf32>
    %286 = vector.broadcast %285 : vector<1x8xf32> to vector<2x8xf32>
    %287 = arith.mulf %283, %286 : vector<2x8xf32>
    %288 = arith.addf %279, %287 : vector<2x8xf32>
    %c32_i32 = arith.constant 32 : i32
    %289 = arith.index_cast %c32_i32 : i32 to index
    %c0_95 = arith.constant 0 : index
    %c0_96 = arith.constant 0 : index
    %290 = vector.load %arg1[%289, %c0_95, %c0_96] : memref<49x2x8xbf16, #tpu.memory_space<vmem>>, vector<1x2x8xbf16>
    %291 = vector.shape_cast %290 : vector<1x2x8xbf16> to vector<2x8xbf16>
    %292 = arith.extf %291 : vector<2x8xbf16> to vector<2x8xf32>
    %293 = arith.index_cast %c32_i32 : i32 to index
    %c0_97 = arith.constant 0 : index
    %294 = vector.load %arg2[%293, %c0_97] : memref<49x8xf32, #tpu.memory_space<vmem>>, vector<1x8xf32>
    %295 = vector.broadcast %294 : vector<1x8xf32> to vector<2x8xf32>
    %296 = arith.mulf %292, %295 : vector<2x8xf32>
    %297 = arith.addf %288, %296 : vector<2x8xf32>
    %c33_i32 = arith.constant 33 : i32
    %298 = arith.index_cast %c33_i32 : i32 to index
    %c0_98 = arith.constant 0 : index
    %c0_99 = arith.constant 0 : index
    %299 = vector.load %arg1[%298, %c0_98, %c0_99] : memref<49x2x8xbf16, #tpu.memory_space<vmem>>, vector<1x2x8xbf16>
    %300 = vector.shape_cast %299 : vector<1x2x8xbf16> to vector<2x8xbf16>
    %301 = arith.extf %300 : vector<2x8xbf16> to vector<2x8xf32>
    %302 = arith.index_cast %c33_i32 : i32 to index
    %c0_100 = arith.constant 0 : index
    %303 = vector.load %arg2[%302, %c0_100] : memref<49x8xf32, #tpu.memory_space<vmem>>, vector<1x8xf32>
    %304 = vector.broadcast %303 : vector<1x8xf32> to vector<2x8xf32>
    %305 = arith.mulf %301, %304 : vector<2x8xf32>
    %306 = arith.addf %297, %305 : vector<2x8xf32>
    %c34_i32 = arith.constant 34 : i32
    %307 = arith.index_cast %c34_i32 : i32 to index
    %c0_101 = arith.constant 0 : index
    %c0_102 = arith.constant 0 : index
    %308 = vector.load %arg1[%307, %c0_101, %c0_102] : memref<49x2x8xbf16, #tpu.memory_space<vmem>>, vector<1x2x8xbf16>
    %309 = vector.shape_cast %308 : vector<1x2x8xbf16> to vector<2x8xbf16>
    %310 = arith.extf %309 : vector<2x8xbf16> to vector<2x8xf32>
    %311 = arith.index_cast %c34_i32 : i32 to index
    %c0_103 = arith.constant 0 : index
    %312 = vector.load %arg2[%311, %c0_103] : memref<49x8xf32, #tpu.memory_space<vmem>>, vector<1x8xf32>
    %313 = vector.broadcast %312 : vector<1x8xf32> to vector<2x8xf32>
    %314 = arith.mulf %310, %313 : vector<2x8xf32>
    %315 = arith.addf %306, %314 : vector<2x8xf32>
    %c35_i32 = arith.constant 35 : i32
    %316 = arith.index_cast %c35_i32 : i32 to index
    %c0_104 = arith.constant 0 : index
    %c0_105 = arith.constant 0 : index
    %317 = vector.load %arg1[%316, %c0_104, %c0_105] : memref<49x2x8xbf16, #tpu.memory_space<vmem>>, vector<1x2x8xbf16>
    %318 = vector.shape_cast %317 : vector<1x2x8xbf16> to vector<2x8xbf16>
    %319 = arith.extf %318 : vector<2x8xbf16> to vector<2x8xf32>
    %320 = arith.index_cast %c35_i32 : i32 to index
    %c0_106 = arith.constant 0 : index
    %321 = vector.load %arg2[%320, %c0_106] : memref<49x8xf32, #tpu.memory_space<vmem>>, vector<1x8xf32>
    %322 = vector.broadcast %321 : vector<1x8xf32> to vector<2x8xf32>
    %323 = arith.mulf %319, %322 : vector<2x8xf32>
    %324 = arith.addf %315, %323 : vector<2x8xf32>
    %c36_i32 = arith.constant 36 : i32
    %325 = arith.index_cast %c36_i32 : i32 to index
    %c0_107 = arith.constant 0 : index
    %c0_108 = arith.constant 0 : index
    %326 = vector.load %arg1[%325, %c0_107, %c0_108] : memref<49x2x8xbf16, #tpu.memory_space<vmem>>, vector<1x2x8xbf16>
    %327 = vector.shape_cast %326 : vector<1x2x8xbf16> to vector<2x8xbf16>
    %328 = arith.extf %327 : vector<2x8xbf16> to vector<2x8xf32>
    %329 = arith.index_cast %c36_i32 : i32 to index
    %c0_109 = arith.constant 0 : index
    %330 = vector.load %arg2[%329, %c0_109] : memref<49x8xf32, #tpu.memory_space<vmem>>, vector<1x8xf32>
    %331 = vector.broadcast %330 : vector<1x8xf32> to vector<2x8xf32>
    %332 = arith.mulf %328, %331 : vector<2x8xf32>
    %333 = arith.addf %324, %332 : vector<2x8xf32>
    %c37_i32 = arith.constant 37 : i32
    %334 = arith.index_cast %c37_i32 : i32 to index
    %c0_110 = arith.constant 0 : index
    %c0_111 = arith.constant 0 : index
    %335 = vector.load %arg1[%334, %c0_110, %c0_111] : memref<49x2x8xbf16, #tpu.memory_space<vmem>>, vector<1x2x8xbf16>
    %336 = vector.shape_cast %335 : vector<1x2x8xbf16> to vector<2x8xbf16>
    %337 = arith.extf %336 : vector<2x8xbf16> to vector<2x8xf32>
    %338 = arith.index_cast %c37_i32 : i32 to index
    %c0_112 = arith.constant 0 : index
    %339 = vector.load %arg2[%338, %c0_112] : memref<49x8xf32, #tpu.memory_space<vmem>>, vector<1x8xf32>
    %340 = vector.broadcast %339 : vector<1x8xf32> to vector<2x8xf32>
    %341 = arith.mulf %337, %340 : vector<2x8xf32>
    %342 = arith.addf %333, %341 : vector<2x8xf32>
    %c38_i32 = arith.constant 38 : i32
    %343 = arith.index_cast %c38_i32 : i32 to index
    %c0_113 = arith.constant 0 : index
    %c0_114 = arith.constant 0 : index
    %344 = vector.load %arg1[%343, %c0_113, %c0_114] : memref<49x2x8xbf16, #tpu.memory_space<vmem>>, vector<1x2x8xbf16>
    %345 = vector.shape_cast %344 : vector<1x2x8xbf16> to vector<2x8xbf16>
    %346 = arith.extf %345 : vector<2x8xbf16> to vector<2x8xf32>
    %347 = arith.index_cast %c38_i32 : i32 to index
    %c0_115 = arith.constant 0 : index
    %348 = vector.load %arg2[%347, %c0_115] : memref<49x8xf32, #tpu.memory_space<vmem>>, vector<1x8xf32>
    %349 = vector.broadcast %348 : vector<1x8xf32> to vector<2x8xf32>
    %350 = arith.mulf %346, %349 : vector<2x8xf32>
    %351 = arith.addf %342, %350 : vector<2x8xf32>
    %c39_i32 = arith.constant 39 : i32
    %352 = arith.index_cast %c39_i32 : i32 to index
    %c0_116 = arith.constant 0 : index
    %c0_117 = arith.constant 0 : index
    %353 = vector.load %arg1[%352, %c0_116, %c0_117] : memref<49x2x8xbf16, #tpu.memory_space<vmem>>, vector<1x2x8xbf16>
    %354 = vector.shape_cast %353 : vector<1x2x8xbf16> to vector<2x8xbf16>
    %355 = arith.extf %354 : vector<2x8xbf16> to vector<2x8xf32>
    %356 = arith.index_cast %c39_i32 : i32 to index
    %c0_118 = arith.constant 0 : index
    %357 = vector.load %arg2[%356, %c0_118] : memref<49x8xf32, #tpu.memory_space<vmem>>, vector<1x8xf32>
    %358 = vector.broadcast %357 : vector<1x8xf32> to vector<2x8xf32>
    %359 = arith.mulf %355, %358 : vector<2x8xf32>
    %360 = arith.addf %351, %359 : vector<2x8xf32>
    %c40_i32 = arith.constant 40 : i32
    %361 = arith.index_cast %c40_i32 : i32 to index
    %c0_119 = arith.constant 0 : index
    %c0_120 = arith.constant 0 : index
    %362 = vector.load %arg1[%361, %c0_119, %c0_120] : memref<49x2x8xbf16, #tpu.memory_space<vmem>>, vector<1x2x8xbf16>
    %363 = vector.shape_cast %362 : vector<1x2x8xbf16> to vector<2x8xbf16>
    %364 = arith.extf %363 : vector<2x8xbf16> to vector<2x8xf32>
    %365 = arith.index_cast %c40_i32 : i32 to index
    %c0_121 = arith.constant 0 : index
    %366 = vector.load %arg2[%365, %c0_121] : memref<49x8xf32, #tpu.memory_space<vmem>>, vector<1x8xf32>
    %367 = vector.broadcast %366 : vector<1x8xf32> to vector<2x8xf32>
    %368 = arith.mulf %364, %367 : vector<2x8xf32>
    %369 = arith.addf %360, %368 : vector<2x8xf32>
    %c41_i32 = arith.constant 41 : i32
    %370 = arith.index_cast %c41_i32 : i32 to index
    %c0_122 = arith.constant 0 : index
    %c0_123 = arith.constant 0 : index
    %371 = vector.load %arg1[%370, %c0_122, %c0_123] : memref<49x2x8xbf16, #tpu.memory_space<vmem>>, vector<1x2x8xbf16>
    %372 = vector.shape_cast %371 : vector<1x2x8xbf16> to vector<2x8xbf16>
    %373 = arith.extf %372 : vector<2x8xbf16> to vector<2x8xf32>
    %374 = arith.index_cast %c41_i32 : i32 to index
    %c0_124 = arith.constant 0 : index
    %375 = vector.load %arg2[%374, %c0_124] : memref<49x8xf32, #tpu.memory_space<vmem>>, vector<1x8xf32>
    %376 = vector.broadcast %375 : vector<1x8xf32> to vector<2x8xf32>
    %377 = arith.mulf %373, %376 : vector<2x8xf32>
    %378 = arith.addf %369, %377 : vector<2x8xf32>
    %c42_i32 = arith.constant 42 : i32
    %379 = arith.index_cast %c42_i32 : i32 to index
    %c0_125 = arith.constant 0 : index
    %c0_126 = arith.constant 0 : index
    %380 = vector.load %arg1[%379, %c0_125, %c0_126] : memref<49x2x8xbf16, #tpu.memory_space<vmem>>, vector<1x2x8xbf16>
    %381 = vector.shape_cast %380 : vector<1x2x8xbf16> to vector<2x8xbf16>
    %382 = arith.extf %381 : vector<2x8xbf16> to vector<2x8xf32>
    %383 = arith.index_cast %c42_i32 : i32 to index
    %c0_127 = arith.constant 0 : index
    %384 = vector.load %arg2[%383, %c0_127] : memref<49x8xf32, #tpu.memory_space<vmem>>, vector<1x8xf32>
    %385 = vector.broadcast %384 : vector<1x8xf32> to vector<2x8xf32>
    %386 = arith.mulf %382, %385 : vector<2x8xf32>
    %387 = arith.addf %378, %386 : vector<2x8xf32>
    %c43_i32 = arith.constant 43 : i32
    %388 = arith.index_cast %c43_i32 : i32 to index
    %c0_128 = arith.constant 0 : index
    %c0_129 = arith.constant 0 : index
    %389 = vector.load %arg1[%388, %c0_128, %c0_129] : memref<49x2x8xbf16, #tpu.memory_space<vmem>>, vector<1x2x8xbf16>
    %390 = vector.shape_cast %389 : vector<1x2x8xbf16> to vector<2x8xbf16>
    %391 = arith.extf %390 : vector<2x8xbf16> to vector<2x8xf32>
    %392 = arith.index_cast %c43_i32 : i32 to index
    %c0_130 = arith.constant 0 : index
    %393 = vector.load %arg2[%392, %c0_130] : memref<49x8xf32, #tpu.memory_space<vmem>>, vector<1x8xf32>
    %394 = vector.broadcast %393 : vector<1x8xf32> to vector<2x8xf32>
    %395 = arith.mulf %391, %394 : vector<2x8xf32>
    %396 = arith.addf %387, %395 : vector<2x8xf32>
    %c44_i32 = arith.constant 44 : i32
    %397 = arith.index_cast %c44_i32 : i32 to index
    %c0_131 = arith.constant 0 : index
    %c0_132 = arith.constant 0 : index
    %398 = vector.load %arg1[%397, %c0_131, %c0_132] : memref<49x2x8xbf16, #tpu.memory_space<vmem>>, vector<1x2x8xbf16>
    %399 = vector.shape_cast %398 : vector<1x2x8xbf16> to vector<2x8xbf16>
    %400 = arith.extf %399 : vector<2x8xbf16> to vector<2x8xf32>
    %401 = arith.index_cast %c44_i32 : i32 to index
    %c0_133 = arith.constant 0 : index
    %402 = vector.load %arg2[%401, %c0_133] : memref<49x8xf32, #tpu.memory_space<vmem>>, vector<1x8xf32>
    %403 = vector.broadcast %402 : vector<1x8xf32> to vector<2x8xf32>
    %404 = arith.mulf %400, %403 : vector<2x8xf32>
    %405 = arith.addf %396, %404 : vector<2x8xf32>
    %c45_i32 = arith.constant 45 : i32
    %406 = arith.index_cast %c45_i32 : i32 to index
    %c0_134 = arith.constant 0 : index
    %c0_135 = arith.constant 0 : index
    %407 = vector.load %arg1[%406, %c0_134, %c0_135] : memref<49x2x8xbf16, #tpu.memory_space<vmem>>, vector<1x2x8xbf16>
    %408 = vector.shape_cast %407 : vector<1x2x8xbf16> to vector<2x8xbf16>
    %409 = arith.extf %408 : vector<2x8xbf16> to vector<2x8xf32>
    %410 = arith.index_cast %c45_i32 : i32 to index
    %c0_136 = arith.constant 0 : index
    %411 = vector.load %arg2[%410, %c0_136] : memref<49x8xf32, #tpu.memory_space<vmem>>, vector<1x8xf32>
    %412 = vector.broadcast %411 : vector<1x8xf32> to vector<2x8xf32>
    %413 = arith.mulf %409, %412 : vector<2x8xf32>
    %414 = arith.addf %405, %413 : vector<2x8xf32>
    %c46_i32 = arith.constant 46 : i32
    %415 = arith.index_cast %c46_i32 : i32 to index
    %c0_137 = arith.constant 0 : index
    %c0_138 = arith.constant 0 : index
    %416 = vector.load %arg1[%415, %c0_137, %c0_138] : memref<49x2x8xbf16, #tpu.memory_space<vmem>>, vector<1x2x8xbf16>
    %417 = vector.shape_cast %416 : vector<1x2x8xbf16> to vector<2x8xbf16>
    %418 = arith.extf %417 : vector<2x8xbf16> to vector<2x8xf32>
    %419 = arith.index_cast %c46_i32 : i32 to index
    %c0_139 = arith.constant 0 : index
    %420 = vector.load %arg2[%419, %c0_139] : memref<49x8xf32, #tpu.memory_space<vmem>>, vector<1x8xf32>
    %421 = vector.broadcast %420 : vector<1x8xf32> to vector<2x8xf32>
    %422 = arith.mulf %418, %421 : vector<2x8xf32>
    %423 = arith.addf %414, %422 : vector<2x8xf32>
    %c47_i32 = arith.constant 47 : i32
    %424 = arith.index_cast %c47_i32 : i32 to index
    %c0_140 = arith.constant 0 : index
    %c0_141 = arith.constant 0 : index
    %425 = vector.load %arg1[%424, %c0_140, %c0_141] : memref<49x2x8xbf16, #tpu.memory_space<vmem>>, vector<1x2x8xbf16>
    %426 = vector.shape_cast %425 : vector<1x2x8xbf16> to vector<2x8xbf16>
    %427 = arith.extf %426 : vector<2x8xbf16> to vector<2x8xf32>
    %428 = arith.index_cast %c47_i32 : i32 to index
    %c0_142 = arith.constant 0 : index
    %429 = vector.load %arg2[%428, %c0_142] : memref<49x8xf32, #tpu.memory_space<vmem>>, vector<1x8xf32>
    %430 = vector.broadcast %429 : vector<1x8xf32> to vector<2x8xf32>
    %431 = arith.mulf %427, %430 : vector<2x8xf32>
    %432 = arith.addf %423, %431 : vector<2x8xf32>
    %c48_i32 = arith.constant 48 : i32
    %433 = arith.index_cast %c48_i32 : i32 to index
    %c0_143 = arith.constant 0 : index
    %c0_144 = arith.constant 0 : index
    %434 = vector.load %arg1[%433, %c0_143, %c0_144] : memref<49x2x8xbf16, #tpu.memory_space<vmem>>, vector<1x2x8xbf16>
    %435 = vector.shape_cast %434 : vector<1x2x8xbf16> to vector<2x8xbf16>
    %436 = arith.extf %435 : vector<2x8xbf16> to vector<2x8xf32>
    %437 = arith.index_cast %c48_i32 : i32 to index
    %c0_145 = arith.constant 0 : index
    %438 = vector.load %arg2[%437, %c0_145] : memref<49x8xf32, #tpu.memory_space<vmem>>, vector<1x8xf32>
    %439 = vector.broadcast %438 : vector<1x8xf32> to vector<2x8xf32>
    %440 = arith.mulf %436, %439 : vector<2x8xf32>
    %441 = arith.addf %432, %440 : vector<2x8xf32>
    %c49_i32 = arith.constant 49 : i32
    %c2_i32_146 = arith.constant 2 : i32
    %442 = arith.muli %arg0, %c2_i32_146 : i32
    %443 = tpu.assume_multiple %442, 2 : i32
    %444 = arith.index_cast %443 : i32 to index
    %c0_147 = arith.constant 0 : index
    %445 = vector.load %arg5[%444, %c0_147] : memref<2x8xf32, #tpu.memory_space<vmem>>, vector<2x8xf32>
    tpu.vector_store %arg5[%444, %c0_147], %441 {strides = array<i32>} : memref<2x8xf32, #tpu.memory_space<vmem>>, vector<2x8xf32>,
    %c0_i32_148 = arith.constant 0 : i32
    %446 = arith.cmpi eq, %arg0, %c0_i32_148 : i32
    %447 = arith.extui %446 : i1 to i32
    %c0_i32_149 = arith.constant 0 : i32
    %448 = arith.cmpi ne, %447, %c0_i32_149 : i32
    scf.if %448 {
      %c0_150 = arith.constant 0 : index
      %c0_151 = arith.constant 0 : index
      %449 = vector.load %arg5[%c0_150, %c0_151] : memref<2x8xf32, #tpu.memory_space<vmem>>, vector<2x8xf32>
      %cst_152 = arith.constant dense<0.000000e+00> : vector<8xf32>
      %450 = vector.multi_reduction <add>, %449, %cst_152 [0] : vector<2x8xf32> to vector<8xf32>
      %451 = vector.shape_cast %450 : vector<8xf32> to vector<1x8xf32>
      %cst_153 = arith.constant 2.000000e+00 : f32
      %452 = vector.broadcast %cst_153 : f32 to vector<1x8xf32>
      %453 = arith.divf %451, %452 : vector<1x8xf32>
      %454 = vector.broadcast %453 : vector<1x8xf32> to vector<2x8xf32>
      %455 = arith.subf %449, %454 : vector<2x8xf32>
      %456 = vector.broadcast %453 : vector<1x8xf32> to vector<2x8xf32>
      %457 = arith.subf %449, %456 : vector<2x8xf32>
      %458 = arith.mulf %455, %457 : vector<2x8xf32>
      %cst_154 = arith.constant dense<0.000000e+00> : vector<8xf32>
      %459 = vector.multi_reduction <add>, %458, %cst_154 [0] : vector<2x8xf32> to vector<8xf32>
      %460 = vector.shape_cast %459 : vector<8xf32> to vector<1x8xf32>
      %cst_155 = arith.constant 2.000000e+00 : f32
      %461 = vector.broadcast %cst_155 : f32 to vector<1x8xf32>
      %462 = arith.divf %460, %461 : vector<1x8xf32>
      %463 = vector.broadcast %453 : vector<1x8xf32> to vector<2x8xf32>
      %464 = arith.subf %449, %463 : vector<2x8xf32>
      %cst_156 = arith.constant 9.99999974E-6 : f32
      %465 = vector.broadcast %cst_156 : f32 to vector<1x8xf32>
      %466 = arith.addf %462, %465 : vector<1x8xf32>
      %467 = math.rsqrt %466 : vector<1x8xf32>
      %468 = vector.broadcast %467 : vector<1x8xf32> to vector<2x8xf32>
      %469 = arith.mulf %464, %468 : vector<2x8xf32>
      %c0_157 = arith.constant 0 : index
      %c0_158 = arith.constant 0 : index
      %470 = vector.load %arg3[%c0_157, %c0_158] : memref<8x16xf32, #tpu.memory_space<vmem>>, vector<8x16xf32>
      %cst_159 = arith.constant dense<0.000000e+00> : vector<2x16xf32>
      %471 = tpu.matmul %469, %470, %cst_159 {dimension_numbers = #tpu.dot_dimension_numbers<[1], [0], [0], [1], [0, 0, 1, 1], [], []>} : vector<2x8xf32>, vector<8x16xf32>, vector<2x16xf32> -> vector<2x16xf32>
      %cst_160 = arith.constant dense<0.000000e+00> : vector<16xf32>
      %472 = vector.multi_reduction <add>, %471, %cst_160 [0] : vector<2x16xf32> to vector<16xf32>
      %473 = vector.shape_cast %472 : vector<16xf32> to vector<1x16xf32>
      %cst_161 = arith.constant 2.000000e+00 : f32
      %474 = vector.broadcast %cst_161 : f32 to vector<1x16xf32>
      %475 = arith.divf %473, %474 : vector<1x16xf32>
      %476 = vector.broadcast %475 : vector<1x16xf32> to vector<2x16xf32>
      %477 = arith.subf %471, %476 : vector<2x16xf32>
      %478 = vector.broadcast %475 : vector<1x16xf32> to vector<2x16xf32>
      %479 = arith.subf %471, %478 : vector<2x16xf32>
      %480 = arith.mulf %477, %479 : vector<2x16xf32>
      %cst_162 = arith.constant dense<0.000000e+00> : vector<16xf32>
      %481 = vector.multi_reduction <add>, %480, %cst_162 [0] : vector<2x16xf32> to vector<16xf32>
      %482 = vector.shape_cast %481 : vector<16xf32> to vector<1x16xf32>
      %cst_163 = arith.constant 2.000000e+00 : f32
      %483 = vector.broadcast %cst_163 : f32 to vector<1x16xf32>
      %484 = arith.divf %482, %483 : vector<1x16xf32>
      %485 = vector.broadcast %475 : vector<1x16xf32> to vector<2x16xf32>
      %486 = arith.subf %471, %485 : vector<2x16xf32>
      %cst_164 = arith.constant 9.99999974E-6 : f32
      %487 = vector.broadcast %cst_164 : f32 to vector<1x16xf32>
      %488 = arith.addf %484, %487 : vector<1x16xf32>
      %489 = math.rsqrt %488 : vector<1x16xf32>
      %490 = vector.broadcast %489 : vector<1x16xf32> to vector<2x16xf32>
      %491 = arith.mulf %486, %490 : vector<2x16xf32>
      %c0_165 = arith.constant 0 : index
      %c0_166 = arith.constant 0 : index
      %492 = vector.load %arg4[%c0_165, %c0_166] : memref<2x16xf32, #tpu.memory_space<vmem>>, vector<2x16xf32>
      tpu.vector_store %arg4[%c0_165, %c0_166], %491 {strides = array<i32>} : memref<2x16xf32, #tpu.memory_space<vmem>>, vector<2x16xf32>,
    } else {
    }
    return
  }
  func.func @transform_0(%arg0: i32) -> (i32, i32, i32) {
    %c0_i32 = arith.constant 0 : i32
    %c0_i32_0 = arith.constant 0 : i32
    %c0_i32_1 = arith.constant 0 : i32
    return %c0_i32, %arg0, %c0_i32_0 : i32, i32, i32
  }
  func.func @transform_1(%arg0: i32) -> (i32, i32) {
    %c0_i32 = arith.constant 0 : i32
    %c0_i32_0 = arith.constant 0 : i32
    %c0_i32_1 = arith.constant 0 : i32
    return %c0_i32, %c0_i32_0 : i32, i32
  }
  func.func @transform_2(%arg0: i32) -> (i32, i32) {
    %c0_i32 = arith.constant 0 : i32
    %c0_i32_0 = arith.constant 0 : i32
    %c0_i32_1 = arith.constant 0 : i32
    return %c0_i32, %c0_i32_0 : i32, i32
  }
  func.func @transform_3(%arg0: i32) -> (i32, i32) {
    %c0_i32 = arith.constant 0 : i32
    %c0_i32_0 = arith.constant 0 : i32
    %c0_i32_1 = arith.constant 0 : i32
    return %c0_i32, %c0_i32_0 : i32, i32
  }
}

</mosaic_0001>

<bundles_post_ra>
// kernel: tpu_custom_call.1
= control target key start
LH: loop header
LB: loop body
LE: loop exit
PB: predicated region body
PF: predicated region fallthrough
CT: control target
= control target key end

     0   :  { %v783_v2 = vmov 0.0   ;;  %vm784_vm0 = vmmov 0   ;;  %s1118_s0 = inlined_call_operand.vmem [shape: bf16[49,2,8], index: 0, kind: input, shape index: {}]   ;;  %s1119_s1 = inlined_call_operand.vmem [shape: f32[49,8], index: 1, kind: input, shape index: {}]   ;;  %s1120_s2 = inlined_call_operand.vmem [shape: f32[8,16], index: 2, kind: input, shape index: {}]   ;;  %s1121_s3 = inlined_call_operand.hbm [shape: f32[2,16], index: 3, kind: output, shape index: {}]  }
   0x1   :  { %v535_v0 = vld [vmem:[%s1120_s2] sm:$0xff]  ;;  %747 = vmatprep.subr.mxu0 %v783_v2  ;;  %749 = vmatprep.mubr.msk.f32.mxu0 %vm784_vm0, %v783_v2  ;;  %v662_v31 = vld [vmem:[%s1118_s0 + $0x8] sm:$0x1]  ;;  %v664_v36 = vld [vmem:[%s1118_s0 + $0x9] sm:$0x1] }
   0x2   :  { %v15_v1 = vld [vmem:[%s1118_s0] sm:$0x1]  ;;  %v648_v5 = vld [vmem:[%s1118_s0 + $0x1] sm:$0x1]  ;;  %748 = vmatpush3.msra.mxu0 %v535_v0  ;;  %v650_v8 = vld [vmem:[%s1118_s0 + $0x2] sm:$0x1]  ;;  %v96_v39 = vunpack.c.l.bf16 %v662_v31  ;;  %v106_v44 = vunpack.c.l.bf16 %v664_v36 }
   0x3   :  { %v16_v3 = vunpack.c.l.bf16 %v15_v1  ;;  %v647_v4 = vld [vmem:[%s1119_s1] ss:$0 sm:$0xff]  ;;  %v649_v6 = vld [vmem:[%s1119_s1 + $0x1] ss:$0 sm:$0xff]  ;;  %v26_v7 = vunpack.c.l.bf16 %v648_v5  ;;  %v651_v9 = vld [vmem:[%s1119_s1 + $0x2] ss:$0 sm:$0xff]  ;;  %v36_v12 = vunpack.c.l.bf16 %v650_v8 }
   0x4   :  { %v652_v10 = vld [vmem:[%s1118_s0 + $0x3] sm:$0x1]  ;;  %v654_v15 = vld [vmem:[%s1118_s0 + $0x4] sm:$0x1]  ;;  %v656_v18 = vld [vmem:[%s1118_s0 + $0x5] sm:$0x1] }
   0x5   :  { %v22_v11 = vmul.f32 %v647_v4, %v16_v3  ;;  %v46_v13 = vunpack.c.l.bf16 %v652_v10  ;;  %v653_v14 = vld [vmem:[%s1119_s1 + $0x3] ss:$0 sm:$0xff]  ;;  %v32_v16 = vmul.f32 %v649_v6, %v26_v7  ;;  %v56_v17 = vunpack.c.l.bf16 %v654_v15  ;;  %v655_v20 = vld [vmem:[%s1119_s1 + $0x4] ss:$0 sm:$0xff]  ;;  %v658_v21 = vld [vmem:[%s1118_s0 + $0x6] sm:$0x1] }
   0x6   :  { %v42_v19 = vmul.f32 %v651_v9, %v36_v12  ;;  %v66_v24 = vunpack.c.l.bf16 %v656_v18  ;;  %v657_v25 = vld [vmem:[%s1119_s1 + $0x5] ss:$0 sm:$0xff]  ;;  %v660_v26 = vld [vmem:[%s1118_s0 + $0x7] sm:$0x1]  ;;  %v76_v29 = vunpack.c.l.bf16 %v658_v21  ;;  %v659_v30 = vld [vmem:[%s1119_s1 + $0x6] ss:$0 sm:$0xff] }
   0x7   :  { %v33_v22 = vadd.f32 %v32_v16, %v22_v11  ;;  %v52_v23 = vmul.f32 %v653_v14, %v46_v13  ;;  %v62_v28 = vmul.f32 %v655_v20, %v56_v17  ;;  %v86_v34 = vunpack.c.l.bf16 %v660_v26  ;;  %v661_v35 = vld [vmem:[%s1119_s1 + $0x7] ss:$0 sm:$0xff]  ;;  %v663_v40 = vld [vmem:[%s1119_s1 + $0x8] ss:$0 sm:$0xff]  ;;  %v666_v41 = vld [vmem:[%s1118_s0 + $0xa] sm:$0x1] }
   0x8   :  { %v72_v33 = vmul.f32 %v657_v25, %v66_v24  ;;  %v82_v38 = vmul.f32 %v659_v30, %v76_v29  ;;  %v665_v45 = vld [vmem:[%s1119_s1 + $0x9] ss:$0 sm:$0xff]  ;;  %v668_v46 = vld [vmem:[%s1118_s0 + $0xb] sm:$0x1]  ;;  %v102_v48 = vmul.f32 %v663_v40, %v96_v39  ;;  %v116_v49 = vunpack.c.l.bf16 %v666_v41  ;;  %v667_v50 = vld [vmem:[%s1119_s1 + $0xa] ss:$0 sm:$0xff] }
   0x9   :  { %v43_v27 = vadd.f32 %v42_v19, %v33_v22  ;;  %v92_v43 = vmul.f32 %v661_v35, %v86_v34  ;;  %v670_v51 = vld [vmem:[%s1118_s0 + $0xc] sm:$0x1]  ;;  %v112_v53 = vmul.f32 %v665_v45, %v106_v44  ;;  %v126_v54 = vunpack.c.l.bf16 %v668_v46  ;;  %v669_v55 = vld [vmem:[%s1119_s1 + $0xb] ss:$0 sm:$0xff]  ;;  %v672_v56 = vld [vmem:[%s1118_s0 + $0xd] sm:$0x1] }
   0xa   :  { %v122_v58 = vmul.f32 %v667_v50, %v116_v49  ;;  %v136_v59 = vunpack.c.l.bf16 %v670_v51  ;;  %v671_v60 = vld [vmem:[%s1119_s1 + $0xc] ss:$0 sm:$0xff]  ;;  %v674_v61 = vld [vmem:[%s1118_s0 + $0xe] sm:$0x1]  ;;  %v146_v0 = vunpack.c.l.bf16 %v672_v56  ;;  %v673_v1 = vld [vmem:[%s1119_s1 + $0xd] ss:$0 sm:$0xff] }
   0xb   :  { %v53_v32 = vadd.f32 %v52_v23, %v43_v27  ;;  %v132_v63 = vmul.f32 %v669_v55, %v126_v54  ;;  %v676_v2 = vld [vmem:[%s1118_s0 + $0xf] sm:$0x1]  ;;  %v156_v5 = vunpack.c.l.bf16 %v674_v61  ;;  %v675_v6 = vld [vmem:[%s1119_s1 + $0xe] ss:$0 sm:$0xff]  ;;  %v678_v7 = vld [vmem:[%s1118_s0 + $0x10] sm:$0x1] }
   0xc   :  { %v142_v4 = vmul.f32 %v671_v60, %v136_v59  ;;  %v152_v9 = vmul.f32 %v673_v1, %v146_v0  ;;  %v166_v10 = vunpack.c.l.bf16 %v676_v2  ;;  %v677_v11 = vld [vmem:[%s1119_s1 + $0xf] ss:$0 sm:$0xff]  ;;  %v680_v12 = vld [vmem:[%s1118_s0 + $0x11] sm:$0x1]  ;;  %v176_v15 = vunpack.c.l.bf16 %v678_v7  ;;  %v679_v16 = vld [vmem:[%s1119_s1 + $0x10] ss:$0 sm:$0xff] }
   0xd   :  { %v63_v37 = vadd.f32 %v62_v28, %v53_v32  ;;  %v162_v14 = vmul.f32 %v675_v6, %v156_v5  ;;  %v682_v17 = vld [vmem:[%s1118_s0 + $0x12] sm:$0x1]  ;;  %v186_v20 = vunpack.c.l.bf16 %v680_v12  ;;  %v681_v21 = vld [vmem:[%s1119_s1 + $0x11] ss:$0 sm:$0xff]  ;;  %v684_v22 = vld [vmem:[%s1118_s0 + $0x13] sm:$0x1] }
   0xe   :  { %v172_v19 = vmul.f32 %v677_v11, %v166_v10  ;;  %v182_v24 = vmul.f32 %v679_v16, %v176_v15  ;;  %v196_v25 = vunpack.c.l.bf16 %v682_v17  ;;  %v683_v26 = vld [vmem:[%s1119_s1 + $0x12] ss:$0 sm:$0xff]  ;;  %v686_v27 = vld [vmem:[%s1118_s0 + $0x14] sm:$0x1] }
   0xf   :  { %v73_v42 = vadd.f32 %v72_v33, %v63_v37 }
  0x11   :  { %v83_v47 = vadd.f32 %v82_v38, %v73_v42 }
  0x13   :  { %v93_v52 = vadd.f32 %v92_v43, %v83_v47 }
  0x15   :  { %v103_v57 = vadd.f32 %v102_v48, %v93_v52 }
  0x17   :  { %v113_v62 = vadd.f32 %v112_v53, %v103_v57 }
  0x19   :  { %v123_v3 = vadd.f32 %v122_v58, %v113_v62 }
  0x1b   :  { %v133_v8 = vadd.f32 %v132_v63, %v123_v3 }
  0x1d   :  { %v143_v13 = vadd.f32 %v142_v4, %v133_v8 }
  0x1f   :  { %v153_v18 = vadd.f32 %v152_v9, %v143_v13 }
  0x21   :  { %v163_v23 = vadd.f32 %v162_v14, %v153_v18 }
  0x22   :  { %8 = vsyncpa [#allocation4], 0  ;;  %v192_v29 = vmul.f32 %v681_v21, %v186_v20  ;;  %v206_v30 = vunpack.c.l.bf16 %v684_v22  ;;  %v685_v31 = vld [vmem:[%s1119_s1 + $0x13] ss:$0 sm:$0xff]  ;;  %v688_v32 = vld [vmem:[%s1118_s0 + $0x15] sm:$0x1]  ;;  %v202_v34 = vmul.f32 %v683_v26, %v196_v25  ;;  %v216_v35 = vunpack.c.l.bf16 %v686_v27 }
  0x23   :  { %v173_v28 = vadd.f32 %v172_v19, %v163_v23  ;;  %v687_v36 = vld [vmem:[%s1119_s1 + $0x14] ss:$0 sm:$0xff]  ;;  %v690_v37 = vld [vmem:[%s1118_s0 + $0x16] sm:$0x1]  ;;  %v226_v40 = vunpack.c.l.bf16 %v688_v32  ;;  %v689_v41 = vld [vmem:[%s1119_s1 + $0x15] ss:$0 sm:$0xff] }
  0x24   :  { %v212_v39 = vmul.f32 %v685_v31, %v206_v30  ;;  %v692_v42 = vld [vmem:[%s1118_s0 + $0x17] sm:$0x1]  ;;  %v222_v44 = vmul.f32 %v687_v36, %v216_v35  ;;  %v236_v45 = vunpack.c.l.bf16 %v690_v37  ;;  %v691_v46 = vld [vmem:[%s1119_s1 + $0x16] ss:$0 sm:$0xff]  ;;  %v694_v47 = vld [vmem:[%s1118_s0 + $0x18] sm:$0x1] }
  0x25   :  { %v183_v33 = vadd.f32 %v182_v24, %v173_v28  ;;  %v232_v49 = vmul.f32 %v689_v41, %v226_v40  ;;  %v246_v50 = vunpack.c.l.bf16 %v692_v42  ;;  %v693_v51 = vld [vmem:[%s1119_s1 + $0x17] ss:$0 sm:$0xff]  ;;  %v696_v52 = vld [vmem:[%s1118_s0 + $0x19] sm:$0x1]  ;;  %v256_v55 = vunpack.c.l.bf16 %v694_v47  ;;  %v695_v56 = vld [vmem:[%s1119_s1 + $0x18] ss:$0 sm:$0xff] }
  0x26   :  { %v242_v54 = vmul.f32 %v691_v46, %v236_v45  ;;  %v698_v57 = vld [vmem:[%s1118_s0 + $0x1a] sm:$0x1]  ;;  %v266_v60 = vunpack.c.l.bf16 %v696_v52  ;;  %v697_v61 = vld [vmem:[%s1119_s1 + $0x19] ss:$0 sm:$0xff]  ;;  %v700_v62 = vld [vmem:[%s1118_s0 + $0x1b] sm:$0x1] }
  0x27   :  { %v193_v38 = vadd.f32 %v192_v29, %v183_v33  ;;  %v252_v59 = vmul.f32 %v693_v51, %v246_v50  ;;  %v262_v0 = vmul.f32 %v695_v56, %v256_v55  ;;  %v276_v1 = vunpack.c.l.bf16 %v698_v57  ;;  %v699_v2 = vld [vmem:[%s1119_s1 + $0x1a] ss:$0 sm:$0xff]  ;;  %v702_v3 = vld [vmem:[%s1118_s0 + $0x1c] sm:$0x1]  ;;  %v701_v7 = vld [vmem:[%s1119_s1 + $0x1b] ss:$0 sm:$0xff] }
  0x28   :  { %v272_v5 = vmul.f32 %v697_v61, %v266_v60  ;;  %v286_v6 = vunpack.c.l.bf16 %v700_v62  ;;  %v704_v8 = vld [vmem:[%s1118_s0 + $0x1d] sm:$0x1]  ;;  %v296_v11 = vunpack.c.l.bf16 %v702_v3  ;;  %v703_v12 = vld [vmem:[%s1119_s1 + $0x1c] ss:$0 sm:$0xff]  ;;  %v706_v13 = vld [vmem:[%s1118_s0 + $0x1e] sm:$0x1] }
  0x29   :  { %v203_v43 = vadd.f32 %v202_v34, %v193_v38  ;;  %v282_v10 = vmul.f32 %v699_v2, %v276_v1  ;;  %v306_v16 = vunpack.c.l.bf16 %v704_v8  ;;  %v705_v17 = vld [vmem:[%s1119_s1 + $0x1d] ss:$0 sm:$0xff]  ;;  %v708_v18 = vld [vmem:[%s1118_s0 + $0x1f] sm:$0x1]  ;;  %v316_v21 = vunpack.c.l.bf16 %v706_v13  ;;  %v707_v22 = vld [vmem:[%s1119_s1 + $0x1e] ss:$0 sm:$0xff] }
  0x2a   :  { %v292_v15 = vmul.f32 %v701_v7, %v286_v6  ;;  %v302_v20 = vmul.f32 %v703_v12, %v296_v11  ;;  %v710_v23 = vld [vmem:[%s1118_s0 + $0x20] sm:$0x1]  ;;  %v326_v26 = vunpack.c.l.bf16 %v708_v18  ;;  %v709_v27 = vld [vmem:[%s1119_s1 + $0x1f] ss:$0 sm:$0xff]  ;;  %v712_v28 = vld [vmem:[%s1118_s0 + $0x21] sm:$0x1] }
  0x2b   :  { %v213_v48 = vadd.f32 %v212_v39, %v203_v43  ;;  %v312_v25 = vmul.f32 %v705_v17, %v306_v16  ;;  %v322_v30 = vmul.f32 %v707_v22, %v316_v21  ;;  %v336_v31 = vunpack.c.l.bf16 %v710_v23  ;;  %v711_v32 = vld [vmem:[%s1119_s1 + $0x20] ss:$0 sm:$0xff]  ;;  %v714_v33 = vld [vmem:[%s1118_s0 + $0x22] sm:$0x1]  ;;  %v713_v37 = vld [vmem:[%s1119_s1 + $0x21] ss:$0 sm:$0xff] }
  0x2c   :  { %v332_v35 = vmul.f32 %v709_v27, %v326_v26  ;;  %v346_v36 = vunpack.c.l.bf16 %v712_v28  ;;  %v716_v38 = vld [vmem:[%s1118_s0 + $0x23] sm:$0x1]  ;;  %v356_v41 = vunpack.c.l.bf16 %v714_v33  ;;  %v715_v42 = vld [vmem:[%s1119_s1 + $0x22] ss:$0 sm:$0xff]  ;;  %v718_v43 = vld [vmem:[%s1118_s0 + $0x24] sm:$0x1] }
  0x2d   :  { %v223_v53 = vadd.f32 %v222_v44, %v213_v48  ;;  %v342_v40 = vmul.f32 %v711_v32, %v336_v31  ;;  %v366_v46 = vunpack.c.l.bf16 %v716_v38  ;;  %v717_v47 = vld [vmem:[%s1119_s1 + $0x23] ss:$0 sm:$0xff]  ;;  %v720_v48 = vld [vmem:[%s1118_s0 + $0x25] sm:$0x1]  ;;  %v376_v51 = vunpack.c.l.bf16 %v718_v43  ;;  %v719_v52 = vld [vmem:[%s1119_s1 + $0x24] ss:$0 sm:$0xff] }
  0x2e   :  { %v352_v45 = vmul.f32 %v713_v37, %v346_v36  ;;  %v362_v50 = vmul.f32 %v715_v42, %v356_v41  ;;  %v386_v56 = vunpack.c.l.bf16 %v720_v48  ;;  %v721_v57 = vld [vmem:[%s1119_s1 + $0x25] ss:$0 sm:$0xff]  ;;  %v723_v62 = vld [vmem:[%s1119_s1 + $0x26] ss:$0 sm:$0xff]  ;;  %v725_v3 = vld [vmem:[%s1119_s1 + $0x27] ss:$0 sm:$0xff] }
  0x2f   :  { %v233_v58 = vadd.f32 %v232_v49, %v223_v53  ;;  %v722_v53 = vld [vmem:[%s1118_s0 + $0x26] sm:$0x1]  ;;  %v372_v55 = vmul.f32 %v717_v47, %v366_v46  ;;  %v382_v60 = vmul.f32 %v719_v52, %v376_v51  ;;  %v727_v8 = vld [vmem:[%s1119_s1 + $0x28] ss:$0 sm:$0xff]  ;;  %v729_v13 = vld [vmem:[%s1119_s1 + $0x29] ss:$0 sm:$0xff] }
  0x30   :  { %v396_v61 = vunpack.c.l.bf16 %v722_v53  ;;  %v392_v1 = vmul.f32 %v721_v57, %v386_v56  ;;  %v731_v18 = vld [vmem:[%s1119_s1 + $0x2a] ss:$0 sm:$0xff]  ;;  %v733_v23 = vld [vmem:[%s1119_s1 + $0x2b] ss:$0 sm:$0xff]  ;;  %v735_v28 = vld [vmem:[%s1119_s1 + $0x2c] ss:$0 sm:$0xff] }
  0x31   :  { %v243_v63 = vadd.f32 %v242_v54, %v233_v58  ;;  %v724_v58 = vld [vmem:[%s1118_s0 + $0x27] sm:$0x1]  ;;  %v737_v33 = vld [vmem:[%s1119_s1 + $0x2d] ss:$0 sm:$0xff]  ;;  %v739_v38 = vld [vmem:[%s1119_s1 + $0x2e] ss:$0 sm:$0xff] }
  0x32   :  { %v406_v2 = vunpack.c.l.bf16 %v724_v58  ;;  %v402_v6 = vmul.f32 %v723_v62, %v396_v61  ;;  %v741_v43 = vld [vmem:[%s1119_s1 + $0x2f] ss:$0 sm:$0xff]  ;;  %v743_v47 = vld [vmem:[%s1119_s1 + $0x30] ss:$0 sm:$0xff]  ;;  %vm506_vm1 = vcmask 58368   ;;  %vm536_vm2 = vcmask 64512  }
  0x33   :  { %v253_v4 = vadd.f32 %v252_v59, %v243_v63  ;;  %v726_v63 = vld [vmem:[%s1118_s0 + $0x28] sm:$0x1]  ;;  %vm610_vm3 = vcmask 123904  }
  0x34   :  { %v416_v7 = vunpack.c.l.bf16 %v726_v63  ;;  %v412_v11 = vmul.f32 %v725_v3, %v406_v2 }
  0x35   :  { %v263_v9 = vadd.f32 %v262_v0, %v253_v4  ;;  %v728_v4 = vld [vmem:[%s1118_s0 + $0x29] sm:$0x1] }
  0x36   :  { %v426_v12 = vunpack.c.l.bf16 %v728_v4  ;;  %v422_v16 = vmul.f32 %v727_v8, %v416_v7 }
  0x37   :  { %v273_v14 = vadd.f32 %v272_v5, %v263_v9  ;;  %v730_v9 = vld [vmem:[%s1118_s0 + $0x2a] sm:$0x1] }
  0x38   :  { %v436_v17 = vunpack.c.l.bf16 %v730_v9  ;;  %v432_v21 = vmul.f32 %v729_v13, %v426_v12 }
  0x39   :  { %v283_v19 = vadd.f32 %v282_v10, %v273_v14  ;;  %v732_v14 = vld [vmem:[%s1118_s0 + $0x2b] sm:$0x1] }
  0x3a   :  { %v446_v22 = vunpack.c.l.bf16 %v732_v14  ;;  %v442_v26 = vmul.f32 %v731_v18, %v436_v17 }
  0x3b   :  { %v293_v24 = vadd.f32 %v292_v15, %v283_v19  ;;  %v734_v19 = vld [vmem:[%s1118_s0 + $0x2c] sm:$0x1] }
  0x3c   :  { %v456_v27 = vunpack.c.l.bf16 %v734_v19  ;;  %v452_v31 = vmul.f32 %v733_v23, %v446_v22 }
  0x3d   :  { %v303_v29 = vadd.f32 %v302_v20, %v293_v24  ;;  %v736_v24 = vld [vmem:[%s1118_s0 + $0x2d] sm:$0x1] }
  0x3e   :  { %v466_v32 = vunpack.c.l.bf16 %v736_v24  ;;  %v462_v36 = vmul.f32 %v735_v28, %v456_v27 }
  0x3f   :  { %v313_v34 = vadd.f32 %v312_v25, %v303_v29  ;;  %v738_v29 = vld [vmem:[%s1118_s0 + $0x2e] sm:$0x1] }
  0x40   :  { %v476_v37 = vunpack.c.l.bf16 %v738_v29  ;;  %v472_v41 = vmul.f32 %v737_v33, %v466_v32 }
  0x41   :  { %v323_v39 = vadd.f32 %v322_v30, %v313_v34  ;;  %v740_v34 = vld [vmem:[%s1118_s0 + $0x2f] sm:$0x1] }
  0x42   :  { %v486_v42 = vunpack.c.l.bf16 %v740_v34 }
  0x43   :  { %v333_v44 = vadd.f32 %v332_v35, %v323_v39  ;;  %v742_v39 = vld [vmem:[%s1118_s0 + $0x30] sm:$0x1]  ;;  %s785_s0 = smov [#allocation3]  }
  0x44   :  { %v496_v46 = vunpack.c.l.bf16 %v742_v39  ;;  %s639_s1 = sshll.u32 %s785_s0, 4  ;;  %s640_s1 = int_to_ptr.vmem [resolvable:$true] %s639_s1 }
  0x45   :  { %v343_v49 = vadd.f32 %v342_v40, %v333_v44  ;;  %s759_s14 = scalar_lea.vmem %s640_s1, 32  ;;  %p764_p1 = scmp.lt.s32.totalorder %s640_s1, %s640_s1 }
  0x46   :  { %v502_v51 = vmul.f32 %v743_v47, %v496_v46  ;;  %p760_p0 = scmp.ne.s32.totalorder %s640_s1, %s759_s14  ;;  %p765_p2 = scmp.lt.s32.totalorder %s759_s14, %s759_s14 }
  0x47   :  { %v353_v54 = vadd.f32 %v352_v45, %v343_v49  ;;  %v482_v45 = vmul.f32 %v739_v38, %v476_v37  ;;  %v492_v49 = vmul.f32 %v741_v43, %v486_v42 }
  0x48   :  { %p766_p3 = por %p765_p2, %p764_p1 }
  0x49   :  { %v363_v59 = vadd.f32 %v362_v50, %v353_v54 }
  0x4a   :  { %p767_p4 = pnand %p766_p3, %p760_p0 }
  0x4b   :  { %v373_v0 = vadd.f32 %v372_v55, %v363_v59 }
  0x4d   :  { %v383_v5 = vadd.f32 %v382_v60, %v373_v0 }
  0x4f   :  { %v393_v10 = vadd.f32 %v392_v1, %v383_v5 }
  0x51   :  { %v403_v15 = vadd.f32 %v402_v6, %v393_v10 }
  0x53   :  { %v413_v20 = vadd.f32 %v412_v11, %v403_v15 }
  0x55   :  { %v423_v25 = vadd.f32 %v422_v16, %v413_v20 }
  0x57   :  { %v433_v30 = vadd.f32 %v432_v21, %v423_v25 }
  0x59   :  { %v443_v35 = vadd.f32 %v442_v26, %v433_v30 }
  0x5b   :  { %v453_v40 = vadd.f32 %v452_v31, %v443_v35 }
  0x5d   :  { %v463_v44 = vadd.f32 %v462_v36, %v453_v40 }
  0x5f   :  { %v473_v48 = vadd.f32 %v472_v41, %v463_v44 }
  0x61   :  { %v483_v50 = vadd.f32 %v482_v45, %v473_v48 }
  0x63   :  { %v493_v52 = vadd.f32 %v492_v49, %v483_v50 }
  0x65   :  { %v503_v53 = vadd.f32 %v502_v51, %v493_v52 }
  0x67   :  { %507 = vst.msk [vmem:[#allocation2] sm:$0x3] %vm506_vm1, %v503_v53 }
  0x6e   :  { %v512_v54 = vld [vmem:[#allocation2] sm:$0x3] }
  0x6f   :  { %v513_v55 = vsel %vm506_vm1, %v512_v54, 0.0 }
  0x70   :  { %v514_v56 = vrot.slane %v513_v55, 4 }
  0x72   :  { %v515_v57 = vadd.f32 %v514_v56, %v513_v55 }
  0x74   :  { %v516_v58 = vrot.slane %v515_v57, 2 }
  0x76   :  { %v517_v59 = vadd.f32 %v516_v58, %v515_v57 }
  0x78   :  { %v518_v60 = vrot.slane %v517_v59, 1 }
  0x7a   :  { %v519_v61 = vadd.f32 %v518_v60, %v517_v59 }
  0x7c   :  { %v521_v62 = vmul.f32 0.5, %v519_v61 }
  0x7e   :  { %v522_v63 = vsub.f32 %v512_v54, %v521_v62 }
  0x80   :  { %v523_v0 = vmul.f32 %v522_v63, %v522_v63 }
  0x82   :  { %v524_v1 = vsel %vm506_vm1, %v523_v0, 0.0 }
  0x83   :  { %v525_v2 = vrot.slane %v524_v1, 4 }
  0x85   :  { %v526_v3 = vadd.f32 %v525_v2, %v524_v1 }
  0x87   :  { %v527_v4 = vrot.slane %v526_v3, 2 }
  0x89   :  { %v528_v5 = vadd.f32 %v527_v4, %v526_v3 }
  0x8b   :  { %v529_v6 = vrot.slane %v528_v5, 1 }
  0x8d   :  { %v530_v7 = vadd.f32 %v529_v6, %v528_v5 }
  0x8f   :  { %v531_v8 = vmul.f32 0.5, %v530_v7 }
  0x91   :  { %v532_v9 = vadd.f32 1e-05, %v531_v8 }
  0x93   :  { %755 = vrsqrt.f32 %v532_v9 }
  0x9d   :  { %v756_v10 = vpop.eup %755 }
  0x9e   :  { %v534_v11 = vmul.f32 %v756_v10, %v522_v63 }
  0xa0   :  { %750 = vmatmul.mubr.msk.f32.vlgmr.msra.gmra.mrb[0].mxu0 %vm536_vm2, %v534_v11 }
 0x173   :  { %v606_v12 = vpop.f32.mrb[0].mxu0 }
 0x174   :  { %v611_v13 = vsel %vm610_vm3, %v606_v12, 0.0  ;;  %v751_v14 = vpop.f32.mrb[1].mxu0 }
 0x175   :  { %v612_v15 = vrot.slane %v611_v13, 4 }
 0x177   :  { %v613_v16 = vadd.f32 %v612_v15, %v611_v13 }
 0x179   :  { %v614_v17 = vrot.slane %v613_v16, 2 }
 0x17b   :  { %v615_v18 = vadd.f32 %v614_v17, %v613_v16 }
 0x17d   :  { %v616_v19 = vrot.slane %v615_v18, 1 }
 0x17f   :  { %v617_v20 = vadd.f32 %v616_v19, %v615_v18 }
 0x181   :  { %v618_v21 = vmul.f32 0.5, %v617_v20 }
 0x183   :  { %v619_v22 = vsub.f32 %v606_v12, %v618_v21 }
 0x185   :  { %v620_v23 = vmul.f32 %v619_v22, %v619_v22 }
 0x187   :  { %v621_v24 = vsel %vm610_vm3, %v620_v23, 0.0 }
 0x188   :  { %v622_v25 = vrot.slane %v621_v24, 4 }
 0x18a   :  { %v623_v26 = vadd.f32 %v622_v25, %v621_v24 }
 0x18c   :  { %v624_v27 = vrot.slane %v623_v26, 2 }
 0x18e   :  { %v625_v28 = vadd.f32 %v624_v27, %v623_v26 }
 0x190   :  { %v626_v29 = vrot.slane %v625_v28, 1 }
 0x192   :  { %v627_v30 = vadd.f32 %v626_v29, %v625_v28 }
 0x194   :  { %v628_v31 = vmul.f32 0.5, %v627_v30 }
 0x196   :  { %v629_v32 = vadd.f32 1e-05, %v628_v31 }
 0x198   :  { %757 = vrsqrt.f32 %v629_v32 }
 0x1a2   :  { %v758_v33 = vpop.eup %757 }
 0x1a3   :  { %v631_v34 = vmul.f32 %v758_v33, %v619_v22 }
 0x1a5   :  { %632 = vst.msk [vmem:[#allocation3] sm:$0x3] %vm610_vm3, %v631_v34 }
 0x1a6   :  { %770 = shalt.err (!%p767_p4)
}
 0x1a7   :  { %s771_s17 = scalar_lea.hbm %s1121_s3, 32 }
 0x1a8   :  { %p772_p5 = scmp.ne.s32.totalorder %s1121_s3, %s771_s17  ;;  %p775_p6 = scmp.lt.u32.totalorder %s771_s17, %s1121_s3 }
 0x1aa   :  { %p777_p7 = pnand %p775_p6, %p772_p5 }
 0x1ac   :  { %780 = shalt.err (!%p777_p7)
}
 0x1ad   :  { %642 = dma.vmem_to_hbm [thread:$0]  %s640_s1, 32, %s1121_s3, [#allocation4]  }
 0x1ae   :  { %781 = dma.done.wait [#allocation4], 32  }
 0x1af   :  { %782 = vsyncadd [#allocation4], 4294967264 }
 0x1b0   :  { %646 = vsyncpa [#allocation4], 1 }

</bundles_post_ra>
